<compile_context>
chip_gen: v5e
topology: v5e:2x2
jax: 0.10.0
libtpu: 0.0.40
codegen_flags: <defaults>
</compile_context>

<pallas_src>
import jax
import jax.numpy as jnp
from jax.experimental import pallas as pl
from jax.experimental.pallas import tpu as pltpu


def hydro_lstm_kernel(x_ref, win_ref, wrec_ref, bias_ref, h0_ref, c0_ref,
                      wreg_ref, breg_ref, q_ref, hn_ref, cn_ref):
    T = x_ref.shape[0]
    S = h0_ref.shape[1]

    # Batched input projection for all timesteps at once, bias folded in:
    # proj[t, k*S + s] = bias[k, s] + sum_j weight_input[s, k, j] * x[t, j]
    proj = jnp.dot(x_ref[...], win_ref[...],
                   preferred_element_type=jnp.float32) + bias_ref[...]

    # One-time per-gate realignment, OUTSIDE the recurrence (off the critical
    # path).  Inside the loop everything is lane-0-aligned (1, S) math.
    proj_f = proj[:, 0 * S:1 * S]
    proj_i = proj[:, 1 * S:2 * S]
    proj_o = proj[:, 2 * S:3 * S]
    proj_g = proj[:, 3 * S:4 * S]

    wrec = wrec_ref[...]                  # (1, 4*S)  gate-major [f | i | o | g]
    wrec_f = wrec[:, 0 * S:1 * S]
    wrec_i = wrec[:, 1 * S:2 * S]
    wrec_o = wrec[:, 2 * S:3 * S]
    wrec_g = wrec[:, 3 * S:4 * S]

    wreg = wreg_ref[...]                  # (1, S) regression weight
    breg = breg_ref[0, 0]                 # scalar regression bias (SMEM)

    h = h0_ref[...]                       # (1, S)
    c = c0_ref[...]                       # (1, S)

    def sigmoid1(z):
        # sigmoid(z) == 0.5 * tanh(0.5 * z) + 0.5 : single EUP push per gate,
        # scale/bias are free VALU work.
        return 0.5 * jnp.tanh(0.5 * z) + 0.5

    h_rows = [h]                          # row 0 = initial state (torch.cat)
    c_rows = [c]

    # Fully unrolled recurrence (T small & static).  No stores, no lane/sublane
    # re-layout inside the loop -- just 4 FMAs, 4 EUP pushes, and the c/h math.
    for t in range(T):
        f = sigmoid1(proj_f[t:t + 1, :] + wrec_f * h)
        i = sigmoid1(proj_i[t:t + 1, :] + wrec_i * h)
        o = sigmoid1(proj_o[t:t + 1, :] + wrec_o * h)
        g = jnp.tanh(proj_g[t:t + 1, :] + wrec_g * h)
        c = f * c + i * g
        h = o * jnp.tanh(c)
        h_rows.append(h)
        c_rows.append(c)

    # Bulk history stores after the loop (plain aligned row writes).
    h_hist = jnp.concatenate(h_rows, axis=0)            # (T+1, S)
    c_hist = jnp.concatenate(c_rows, axis=0)            # (T+1, S)
    hn_ref[...] = h_hist
    cn_ref[...] = c_hist

    # Regression head, hoisted out of the loop: one batched reduce + one store.
    q_ref[...] = jnp.sum(h_hist[1:, :] * wreg, axis=1, keepdims=True) + breg


def model_hydro_lstm_forward(x, weight_input, weight_recur, bias, w_reg, b_reg,
                             h0=None, c0=None):
    """x: (T, input_size). Returns (q_t (T,1), h_n (T+1,S), c_n (T+1,S))."""
    x = jnp.asarray(x, jnp.float32)
    T, IN = x.shape
    S = weight_recur.shape[1]

    if weight_input.ndim == 2:            # state_size == 1 case: (4, IN)
        w_in_flat = jnp.asarray(weight_input, jnp.float32)               # (4, IN)
    else:                                  # (S, 4, IN) -> (4*S, IN), idx = k*S + s
        w_in_flat = jnp.transpose(jnp.asarray(weight_input, jnp.float32),
                                  (1, 0, 2)).reshape(4 * S, IN)
    w_in_t = w_in_flat.T                   # (IN, 4*S), pre-transposed for the dot

    wrec_flat = jnp.asarray(weight_recur, jnp.float32).reshape(1, 4 * S)
    bias_flat = jnp.asarray(bias, jnp.float32).reshape(1, 4 * S)
    if h0 is None:                         # epoch == 1 path
        h0 = jnp.zeros((1, S), jnp.float32)
    if c0 is None:
        c0 = jnp.zeros((1, S), jnp.float32)
    h0 = jnp.asarray(h0, jnp.float32).reshape(1, S)
    c0 = jnp.asarray(c0, jnp.float32).reshape(1, S)
    w_reg2 = jnp.asarray(w_reg, jnp.float32).reshape(1, S)
    b_reg2 = jnp.asarray(b_reg, jnp.float32).reshape(1, 1)

    vmem = pl.BlockSpec(memory_space=pltpu.MemorySpace.VMEM)
    smem = pl.BlockSpec(memory_space=pltpu.MemorySpace.SMEM)

    q, hn, cn = pl.pallas_call(
        hydro_lstm_kernel,
        out_shape=(
            jax.ShapeDtypeStruct((T, 1), jnp.float32),
            jax.ShapeDtypeStruct((T + 1, S), jnp.float32),
            jax.ShapeDtypeStruct((T + 1, S), jnp.float32),
        ),
        in_specs=[vmem, vmem, vmem, vmem, vmem, vmem, vmem, smem],
        out_specs=(vmem, vmem, vmem),
    )(x, w_in_t, wrec_flat, bias_flat, h0, c0, w_reg2, b_reg2)

    return q, hn, cn


def ref_forward(x, weight_input, weight_recur, bias, w_reg, b_reg):
    """Pure-JAX reference of the PyTorch forward (epoch == 1, eval mode)."""
    T, _ = x.shape
    S = weight_recur.shape[1]
    h = jnp.zeros((S,), jnp.float32)
    c = jnp.zeros((S,), jnp.float32)
    hs, cs = [h], [c]
    for t in range(T):
        if weight_input.ndim == 2:
            proj = (weight_input @ x[t]).reshape(4, 1)
        else:
            proj = jnp.einsum('skj,j->ks', weight_input, x[t])   # (4, S)
        gates = bias + weight_recur * h[None, :] + proj
        f = jax.nn.sigmoid(gates[0])
        i = jax.nn.sigmoid(gates[1])
        o = jax.nn.sigmoid(gates[2])
        g = jnp.tanh(gates[3])
        c = f * c + i * g
        h = o * jnp.tanh(c)
        hs.append(h)
        cs.append(c)
    hn = jnp.stack(hs)
    cn = jnp.stack(cs)
    q = hn @ w_reg.T + jnp.asarray(b_reg).reshape(1, 1)
    return q[1:], hn, cn


def _xavier(key, shape, fan_in, fan_out):
    a = (6.0 / (fan_in + fan_out)) ** 0.5
    return jax.random.uniform(key, shape, jnp.float32, -a, a)


if __name__ == "__main__":
    # Small shapes consistent with the module: seq T=8, input_size=4, state=32.
    T, IN, S = 8, 4, 32

    key = jax.random.PRNGKey(0)
    k1, k2, k3, k4, k5, kx = jax.random.split(key, 6)

    # Deterministic synthetic parameters (xavier-style uniform).
    weight_input = _xavier(k1, (S, 4, IN), 4 * IN, S * IN)   # HYDRO_LSTM.weight_input
    weight_recur = _xavier(k2, (4, S), S, 4)                 # HYDRO_LSTM.weight_recur
    bias = _xavier(k3, (4, S), S, 4)                         # HYDRO_LSTM.bias
    w_reg = _xavier(k4, (1, S), S, 1)                        # regression weight
    b_reg = jax.random.uniform(k5, (1,), jnp.float32,
                               -1.0 / S ** 0.5, 1.0 / S ** 0.5)  # regression bias

    x = jax.random.normal(kx, (T, IN), jnp.float32)

    q, hn, cn = model_hydro_lstm_forward(x, weight_input, weight_recur,
                                         bias, w_reg, b_reg)
    jax.block_until_ready((q, hn, cn))

    q_ref, hn_ref, cn_ref = ref_forward(x, weight_input, weight_recur,
                                        bias, w_reg, b_reg)
    assert q.shape == (T, 1) and hn.shape == (T + 1, S) and cn.shape == (T + 1, S)
    assert jnp.allclose(q, q_ref, atol=1e-5, rtol=1e-5)
    assert jnp.allclose(hn, hn_ref, atol=1e-5, rtol=1e-5)
    assert jnp.allclose(cn, cn_ref, atol=1e-5, rtol=1e-5)

    print("KERNEL_OK")
</pallas_src>

<mosaic_0001>
module attributes {stable_mosaic.version = 11 : i64} {
  func.func @hydro_lstm_kernel(%arg0: memref<8x4xf32, #tpu.memory_space<vmem>>, %arg1: memref<4x128xf32, #tpu.memory_space<vmem>>, %arg2: memref<1x128xf32, #tpu.memory_space<vmem>>, %arg3: memref<1x128xf32, #tpu.memory_space<vmem>>, %arg4: memref<1x32xf32, #tpu.memory_space<vmem>>, %arg5: memref<1x32xf32, #tpu.memory_space<vmem>>, %arg6: memref<1x32xf32, #tpu.memory_space<vmem>>, %arg7: memref<1x1xf32, #tpu.memory_space<smem>>, %arg8: memref<8x1xf32, #tpu.memory_space<vmem>>, %arg9: memref<9x32xf32, #tpu.memory_space<vmem>>, %arg10: memref<9x32xf32, #tpu.memory_space<vmem>>) attributes {dimension_semantics = [], scalar_prefetch = 0 : i64, scratch_operands = 0 : i64, tpu.core_type = #tpu.core_type<tc>} {
    %c0 = arith.constant 0 : index
    %c0_0 = arith.constant 0 : index
    %0 = vector.load %arg0[%c0, %c0_0] : memref<8x4xf32, #tpu.memory_space<vmem>>, vector<8x4xf32>
    %c0_1 = arith.constant 0 : index
    %c0_2 = arith.constant 0 : index
    %1 = vector.load %arg1[%c0_1, %c0_2] : memref<4x128xf32, #tpu.memory_space<vmem>>, vector<4x128xf32>
    %cst = arith.constant dense<0.000000e+00> : vector<8x128xf32>
    %2 = tpu.matmul %0, %1, %cst {dimension_numbers = #tpu.dot_dimension_numbers<[1], [0], [0], [1], [0, 0, 1, 1], [], []>} : vector<8x4xf32>, vector<4x128xf32>, vector<8x128xf32> -> vector<8x128xf32>
    %c0_3 = arith.constant 0 : index
    %c0_4 = arith.constant 0 : index
    %3 = vector.load %arg3[%c0_3, %c0_4] : memref<1x128xf32, #tpu.memory_space<vmem>>, vector<1x128xf32>
    %4 = vector.broadcast %3 : vector<1x128xf32> to vector<8x128xf32>
    %5 = arith.addf %2, %4 : vector<8x128xf32>
    %6 = vector.extract_strided_slice %5 {offsets = [0, 0], sizes = [8, 32], strides = [1, 1]} : vector<8x128xf32> to vector<8x32xf32>
    %7 = vector.extract_strided_slice %5 {offsets = [0, 32], sizes = [8, 32], strides = [1, 1]} : vector<8x128xf32> to vector<8x32xf32>
    %8 = vector.extract_strided_slice %5 {offsets = [0, 64], sizes = [8, 32], strides = [1, 1]} : vector<8x128xf32> to vector<8x32xf32>
    %9 = vector.extract_strided_slice %5 {offsets = [0, 96], sizes = [8, 32], strides = [1, 1]} : vector<8x128xf32> to vector<8x32xf32>
    %c0_5 = arith.constant 0 : index
    %c0_6 = arith.constant 0 : index
    %10 = vector.load %arg2[%c0_5, %c0_6] : memref<1x128xf32, #tpu.memory_space<vmem>>, vector<1x128xf32>
    %11 = vector.extract_strided_slice %10 {offsets = [0, 0], sizes = [1, 32], strides = [1, 1]} : vector<1x128xf32> to vector<1x32xf32>
    %12 = vector.extract_strided_slice %10 {offsets = [0, 32], sizes = [1, 32], strides = [1, 1]} : vector<1x128xf32> to vector<1x32xf32>
    %13 = vector.extract_strided_slice %10 {offsets = [0, 64], sizes = [1, 32], strides = [1, 1]} : vector<1x128xf32> to vector<1x32xf32>
    %14 = vector.extract_strided_slice %10 {offsets = [0, 96], sizes = [1, 32], strides = [1, 1]} : vector<1x128xf32> to vector<1x32xf32>
    %c0_7 = arith.constant 0 : index
    %c0_8 = arith.constant 0 : index
    %15 = vector.load %arg6[%c0_7, %c0_8] : memref<1x32xf32, #tpu.memory_space<vmem>>, vector<1x32xf32>
    %c0_9 = arith.constant 0 : index
    %c0_10 = arith.constant 0 : index
    %16 = memref.load %arg7[%c0_9, %c0_10] : memref<1x1xf32, #tpu.memory_space<smem>>
    %c0_11 = arith.constant 0 : index
    %c0_12 = arith.constant 0 : index
    %17 = vector.load %arg4[%c0_11, %c0_12] : memref<1x32xf32, #tpu.memory_space<vmem>>, vector<1x32xf32>
    %c0_13 = arith.constant 0 : index
    %c0_14 = arith.constant 0 : index
    %18 = vector.load %arg5[%c0_13, %c0_14] : memref<1x32xf32, #tpu.memory_space<vmem>>, vector<1x32xf32>
    %19 = vector.extract_strided_slice %6 {offsets = [0, 0], sizes = [1, 32], strides = [1, 1]} : vector<8x32xf32> to vector<1x32xf32>
    %20 = arith.mulf %11, %17 : vector<1x32xf32>
    %21 = arith.addf %19, %20 : vector<1x32xf32>
    %cst_15 = arith.constant 5.000000e-01 : f32
    %22 = vector.broadcast %cst_15 : f32 to vector<1x32xf32>
    %23 = arith.mulf %22, %21 : vector<1x32xf32>
    %24 = math.tanh %23 : vector<1x32xf32>
    %cst_16 = arith.constant 5.000000e-01 : f32
    %25 = vector.broadcast %cst_16 : f32 to vector<1x32xf32>
    %26 = arith.mulf %25, %24 : vector<1x32xf32>
    %cst_17 = arith.constant 5.000000e-01 : f32
    %27 = vector.broadcast %cst_17 : f32 to vector<1x32xf32>
    %28 = arith.addf %26, %27 : vector<1x32xf32>
    %29 = vector.extract_strided_slice %7 {offsets = [0, 0], sizes = [1, 32], strides = [1, 1]} : vector<8x32xf32> to vector<1x32xf32>
    %30 = arith.mulf %12, %17 : vector<1x32xf32>
    %31 = arith.addf %29, %30 : vector<1x32xf32>
    %cst_18 = arith.constant 5.000000e-01 : f32
    %32 = vector.broadcast %cst_18 : f32 to vector<1x32xf32>
    %33 = arith.mulf %32, %31 : vector<1x32xf32>
    %34 = math.tanh %33 : vector<1x32xf32>
    %cst_19 = arith.constant 5.000000e-01 : f32
    %35 = vector.broadcast %cst_19 : f32 to vector<1x32xf32>
    %36 = arith.mulf %35, %34 : vector<1x32xf32>
    %cst_20 = arith.constant 5.000000e-01 : f32
    %37 = vector.broadcast %cst_20 : f32 to vector<1x32xf32>
    %38 = arith.addf %36, %37 : vector<1x32xf32>
    %39 = vector.extract_strided_slice %8 {offsets = [0, 0], sizes = [1, 32], strides = [1, 1]} : vector<8x32xf32> to vector<1x32xf32>
    %40 = arith.mulf %13, %17 : vector<1x32xf32>
    %41 = arith.addf %39, %40 : vector<1x32xf32>
    %cst_21 = arith.constant 5.000000e-01 : f32
    %42 = vector.broadcast %cst_21 : f32 to vector<1x32xf32>
    %43 = arith.mulf %42, %41 : vector<1x32xf32>
    %44 = math.tanh %43 : vector<1x32xf32>
    %cst_22 = arith.constant 5.000000e-01 : f32
    %45 = vector.broadcast %cst_22 : f32 to vector<1x32xf32>
    %46 = arith.mulf %45, %44 : vector<1x32xf32>
    %cst_23 = arith.constant 5.000000e-01 : f32
    %47 = vector.broadcast %cst_23 : f32 to vector<1x32xf32>
    %48 = arith.addf %46, %47 : vector<1x32xf32>
    %49 = vector.extract_strided_slice %9 {offsets = [0, 0], sizes = [1, 32], strides = [1, 1]} : vector<8x32xf32> to vector<1x32xf32>
    %50 = arith.mulf %14, %17 : vector<1x32xf32>
    %51 = arith.addf %49, %50 : vector<1x32xf32>
    %52 = math.tanh %51 : vector<1x32xf32>
    %53 = arith.mulf %28, %18 : vector<1x32xf32>
    %54 = arith.mulf %38, %52 : vector<1x32xf32>
    %55 = arith.addf %53, %54 : vector<1x32xf32>
    %56 = math.tanh %55 : vector<1x32xf32>
    %57 = arith.mulf %48, %56 : vector<1x32xf32>
    %58 = vector.extract_strided_slice %6 {offsets = [1, 0], sizes = [1, 32], strides = [1, 1]} : vector<8x32xf32> to vector<1x32xf32>
    %59 = arith.mulf %11, %57 : vector<1x32xf32>
    %60 = arith.addf %58, %59 : vector<1x32xf32>
    %cst_24 = arith.constant 5.000000e-01 : f32
    %61 = vector.broadcast %cst_24 : f32 to vector<1x32xf32>
    %62 = arith.mulf %61, %60 : vector<1x32xf32>
    %63 = math.tanh %62 : vector<1x32xf32>
    %cst_25 = arith.constant 5.000000e-01 : f32
    %64 = vector.broadcast %cst_25 : f32 to vector<1x32xf32>
    %65 = arith.mulf %64, %63 : vector<1x32xf32>
    %cst_26 = arith.constant 5.000000e-01 : f32
    %66 = vector.broadcast %cst_26 : f32 to vector<1x32xf32>
    %67 = arith.addf %65, %66 : vector<1x32xf32>
    %68 = vector.extract_strided_slice %7 {offsets = [1, 0], sizes = [1, 32], strides = [1, 1]} : vector<8x32xf32> to vector<1x32xf32>
    %69 = arith.mulf %12, %57 : vector<1x32xf32>
    %70 = arith.addf %68, %69 : vector<1x32xf32>
    %cst_27 = arith.constant 5.000000e-01 : f32
    %71 = vector.broadcast %cst_27 : f32 to vector<1x32xf32>
    %72 = arith.mulf %71, %70 : vector<1x32xf32>
    %73 = math.tanh %72 : vector<1x32xf32>
    %cst_28 = arith.constant 5.000000e-01 : f32
    %74 = vector.broadcast %cst_28 : f32 to vector<1x32xf32>
    %75 = arith.mulf %74, %73 : vector<1x32xf32>
    %cst_29 = arith.constant 5.000000e-01 : f32
    %76 = vector.broadcast %cst_29 : f32 to vector<1x32xf32>
    %77 = arith.addf %75, %76 : vector<1x32xf32>
    %78 = vector.extract_strided_slice %8 {offsets = [1, 0], sizes = [1, 32], strides = [1, 1]} : vector<8x32xf32> to vector<1x32xf32>
    %79 = arith.mulf %13, %57 : vector<1x32xf32>
    %80 = arith.addf %78, %79 : vector<1x32xf32>
    %cst_30 = arith.constant 5.000000e-01 : f32
    %81 = vector.broadcast %cst_30 : f32 to vector<1x32xf32>
    %82 = arith.mulf %81, %80 : vector<1x32xf32>
    %83 = math.tanh %82 : vector<1x32xf32>
    %cst_31 = arith.constant 5.000000e-01 : f32
    %84 = vector.broadcast %cst_31 : f32 to vector<1x32xf32>
    %85 = arith.mulf %84, %83 : vector<1x32xf32>
    %cst_32 = arith.constant 5.000000e-01 : f32
    %86 = vector.broadcast %cst_32 : f32 to vector<1x32xf32>
    %87 = arith.addf %85, %86 : vector<1x32xf32>
    %88 = vector.extract_strided_slice %9 {offsets = [1, 0], sizes = [1, 32], strides = [1, 1]} : vector<8x32xf32> to vector<1x32xf32>
    %89 = arith.mulf %14, %57 : vector<1x32xf32>
    %90 = arith.addf %88, %89 : vector<1x32xf32>
    %91 = math.tanh %90 : vector<1x32xf32>
    %92 = arith.mulf %67, %55 : vector<1x32xf32>
    %93 = arith.mulf %77, %91 : vector<1x32xf32>
    %94 = arith.addf %92, %93 : vector<1x32xf32>
    %95 = math.tanh %94 : vector<1x32xf32>
    %96 = arith.mulf %87, %95 : vector<1x32xf32>
    %97 = vector.extract_strided_slice %6 {offsets = [2, 0], sizes = [1, 32], strides = [1, 1]} : vector<8x32xf32> to vector<1x32xf32>
    %98 = arith.mulf %11, %96 : vector<1x32xf32>
    %99 = arith.addf %97, %98 : vector<1x32xf32>
    %cst_33 = arith.constant 5.000000e-01 : f32
    %100 = vector.broadcast %cst_33 : f32 to vector<1x32xf32>
    %101 = arith.mulf %100, %99 : vector<1x32xf32>
    %102 = math.tanh %101 : vector<1x32xf32>
    %cst_34 = arith.constant 5.000000e-01 : f32
    %103 = vector.broadcast %cst_34 : f32 to vector<1x32xf32>
    %104 = arith.mulf %103, %102 : vector<1x32xf32>
    %cst_35 = arith.constant 5.000000e-01 : f32
    %105 = vector.broadcast %cst_35 : f32 to vector<1x32xf32>
    %106 = arith.addf %104, %105 : vector<1x32xf32>
    %107 = vector.extract_strided_slice %7 {offsets = [2, 0], sizes = [1, 32], strides = [1, 1]} : vector<8x32xf32> to vector<1x32xf32>
    %108 = arith.mulf %12, %96 : vector<1x32xf32>
    %109 = arith.addf %107, %108 : vector<1x32xf32>
    %cst_36 = arith.constant 5.000000e-01 : f32
    %110 = vector.broadcast %cst_36 : f32 to vector<1x32xf32>
    %111 = arith.mulf %110, %109 : vector<1x32xf32>
    %112 = math.tanh %111 : vector<1x32xf32>
    %cst_37 = arith.constant 5.000000e-01 : f32
    %113 = vector.broadcast %cst_37 : f32 to vector<1x32xf32>
    %114 = arith.mulf %113, %112 : vector<1x32xf32>
    %cst_38 = arith.constant 5.000000e-01 : f32
    %115 = vector.broadcast %cst_38 : f32 to vector<1x32xf32>
    %116 = arith.addf %114, %115 : vector<1x32xf32>
    %117 = vector.extract_strided_slice %8 {offsets = [2, 0], sizes = [1, 32], strides = [1, 1]} : vector<8x32xf32> to vector<1x32xf32>
    %118 = arith.mulf %13, %96 : vector<1x32xf32>
    %119 = arith.addf %117, %118 : vector<1x32xf32>
    %cst_39 = arith.constant 5.000000e-01 : f32
    %120 = vector.broadcast %cst_39 : f32 to vector<1x32xf32>
    %121 = arith.mulf %120, %119 : vector<1x32xf32>
    %122 = math.tanh %121 : vector<1x32xf32>
    %cst_40 = arith.constant 5.000000e-01 : f32
    %123 = vector.broadcast %cst_40 : f32 to vector<1x32xf32>
    %124 = arith.mulf %123, %122 : vector<1x32xf32>
    %cst_41 = arith.constant 5.000000e-01 : f32
    %125 = vector.broadcast %cst_41 : f32 to vector<1x32xf32>
    %126 = arith.addf %124, %125 : vector<1x32xf32>
    %127 = vector.extract_strided_slice %9 {offsets = [2, 0], sizes = [1, 32], strides = [1, 1]} : vector<8x32xf32> to vector<1x32xf32>
    %128 = arith.mulf %14, %96 : vector<1x32xf32>
    %129 = arith.addf %127, %128 : vector<1x32xf32>
    %130 = math.tanh %129 : vector<1x32xf32>
    %131 = arith.mulf %106, %94 : vector<1x32xf32>
    %132 = arith.mulf %116, %130 : vector<1x32xf32>
    %133 = arith.addf %131, %132 : vector<1x32xf32>
    %134 = math.tanh %133 : vector<1x32xf32>
    %135 = arith.mulf %126, %134 : vector<1x32xf32>
    %136 = vector.extract_strided_slice %6 {offsets = [3, 0], sizes = [1, 32], strides = [1, 1]} : vector<8x32xf32> to vector<1x32xf32>
    %137 = arith.mulf %11, %135 : vector<1x32xf32>
    %138 = arith.addf %136, %137 : vector<1x32xf32>
    %cst_42 = arith.constant 5.000000e-01 : f32
    %139 = vector.broadcast %cst_42 : f32 to vector<1x32xf32>
    %140 = arith.mulf %139, %138 : vector<1x32xf32>
    %141 = math.tanh %140 : vector<1x32xf32>
    %cst_43 = arith.constant 5.000000e-01 : f32
    %142 = vector.broadcast %cst_43 : f32 to vector<1x32xf32>
    %143 = arith.mulf %142, %141 : vector<1x32xf32>
    %cst_44 = arith.constant 5.000000e-01 : f32
    %144 = vector.broadcast %cst_44 : f32 to vector<1x32xf32>
    %145 = arith.addf %143, %144 : vector<1x32xf32>
    %146 = vector.extract_strided_slice %7 {offsets = [3, 0], sizes = [1, 32], strides = [1, 1]} : vector<8x32xf32> to vector<1x32xf32>
    %147 = arith.mulf %12, %135 : vector<1x32xf32>
    %148 = arith.addf %146, %147 : vector<1x32xf32>
    %cst_45 = arith.constant 5.000000e-01 : f32
    %149 = vector.broadcast %cst_45 : f32 to vector<1x32xf32>
    %150 = arith.mulf %149, %148 : vector<1x32xf32>
    %151 = math.tanh %150 : vector<1x32xf32>
    %cst_46 = arith.constant 5.000000e-01 : f32
    %152 = vector.broadcast %cst_46 : f32 to vector<1x32xf32>
    %153 = arith.mulf %152, %151 : vector<1x32xf32>
    %cst_47 = arith.constant 5.000000e-01 : f32
    %154 = vector.broadcast %cst_47 : f32 to vector<1x32xf32>
    %155 = arith.addf %153, %154 : vector<1x32xf32>
    %156 = vector.extract_strided_slice %8 {offsets = [3, 0], sizes = [1, 32], strides = [1, 1]} : vector<8x32xf32> to vector<1x32xf32>
    %157 = arith.mulf %13, %135 : vector<1x32xf32>
    %158 = arith.addf %156, %157 : vector<1x32xf32>
    %cst_48 = arith.constant 5.000000e-01 : f32
    %159 = vector.broadcast %cst_48 : f32 to vector<1x32xf32>
    %160 = arith.mulf %159, %158 : vector<1x32xf32>
    %161 = math.tanh %160 : vector<1x32xf32>
    %cst_49 = arith.constant 5.000000e-01 : f32
    %162 = vector.broadcast %cst_49 : f32 to vector<1x32xf32>
    %163 = arith.mulf %162, %161 : vector<1x32xf32>
    %cst_50 = arith.constant 5.000000e-01 : f32
    %164 = vector.broadcast %cst_50 : f32 to vector<1x32xf32>
    %165 = arith.addf %163, %164 : vector<1x32xf32>
    %166 = vector.extract_strided_slice %9 {offsets = [3, 0], sizes = [1, 32], strides = [1, 1]} : vector<8x32xf32> to vector<1x32xf32>
    %167 = arith.mulf %14, %135 : vector<1x32xf32>
    %168 = arith.addf %166, %167 : vector<1x32xf32>
    %169 = math.tanh %168 : vector<1x32xf32>
    %170 = arith.mulf %145, %133 : vector<1x32xf32>
    %171 = arith.mulf %155, %169 : vector<1x32xf32>
    %172 = arith.addf %170, %171 : vector<1x32xf32>
    %173 = math.tanh %172 : vector<1x32xf32>
    %174 = arith.mulf %165, %173 : vector<1x32xf32>
    %175 = vector.extract_strided_slice %6 {offsets = [4, 0], sizes = [1, 32], strides = [1, 1]} : vector<8x32xf32> to vector<1x32xf32>
    %176 = arith.mulf %11, %174 : vector<1x32xf32>
    %177 = arith.addf %175, %176 : vector<1x32xf32>
    %cst_51 = arith.constant 5.000000e-01 : f32
    %178 = vector.broadcast %cst_51 : f32 to vector<1x32xf32>
    %179 = arith.mulf %178, %177 : vector<1x32xf32>
    %180 = math.tanh %179 : vector<1x32xf32>
    %cst_52 = arith.constant 5.000000e-01 : f32
    %181 = vector.broadcast %cst_52 : f32 to vector<1x32xf32>
    %182 = arith.mulf %181, %180 : vector<1x32xf32>
    %cst_53 = arith.constant 5.000000e-01 : f32
    %183 = vector.broadcast %cst_53 : f32 to vector<1x32xf32>
    %184 = arith.addf %182, %183 : vector<1x32xf32>
    %185 = vector.extract_strided_slice %7 {offsets = [4, 0], sizes = [1, 32], strides = [1, 1]} : vector<8x32xf32> to vector<1x32xf32>
    %186 = arith.mulf %12, %174 : vector<1x32xf32>
    %187 = arith.addf %185, %186 : vector<1x32xf32>
    %cst_54 = arith.constant 5.000000e-01 : f32
    %188 = vector.broadcast %cst_54 : f32 to vector<1x32xf32>
    %189 = arith.mulf %188, %187 : vector<1x32xf32>
    %190 = math.tanh %189 : vector<1x32xf32>
    %cst_55 = arith.constant 5.000000e-01 : f32
    %191 = vector.broadcast %cst_55 : f32 to vector<1x32xf32>
    %192 = arith.mulf %191, %190 : vector<1x32xf32>
    %cst_56 = arith.constant 5.000000e-01 : f32
    %193 = vector.broadcast %cst_56 : f32 to vector<1x32xf32>
    %194 = arith.addf %192, %193 : vector<1x32xf32>
    %195 = vector.extract_strided_slice %8 {offsets = [4, 0], sizes = [1, 32], strides = [1, 1]} : vector<8x32xf32> to vector<1x32xf32>
    %196 = arith.mulf %13, %174 : vector<1x32xf32>
    %197 = arith.addf %195, %196 : vector<1x32xf32>
    %cst_57 = arith.constant 5.000000e-01 : f32
    %198 = vector.broadcast %cst_57 : f32 to vector<1x32xf32>
    %199 = arith.mulf %198, %197 : vector<1x32xf32>
    %200 = math.tanh %199 : vector<1x32xf32>
    %cst_58 = arith.constant 5.000000e-01 : f32
    %201 = vector.broadcast %cst_58 : f32 to vector<1x32xf32>
    %202 = arith.mulf %201, %200 : vector<1x32xf32>
    %cst_59 = arith.constant 5.000000e-01 : f32
    %203 = vector.broadcast %cst_59 : f32 to vector<1x32xf32>
    %204 = arith.addf %202, %203 : vector<1x32xf32>
    %205 = vector.extract_strided_slice %9 {offsets = [4, 0], sizes = [1, 32], strides = [1, 1]} : vector<8x32xf32> to vector<1x32xf32>
    %206 = arith.mulf %14, %174 : vector<1x32xf32>
    %207 = arith.addf %205, %206 : vector<1x32xf32>
    %208 = math.tanh %207 : vector<1x32xf32>
    %209 = arith.mulf %184, %172 : vector<1x32xf32>
    %210 = arith.mulf %194, %208 : vector<1x32xf32>
    %211 = arith.addf %209, %210 : vector<1x32xf32>
    %212 = math.tanh %211 : vector<1x32xf32>
    %213 = arith.mulf %204, %212 : vector<1x32xf32>
    %214 = vector.extract_strided_slice %6 {offsets = [5, 0], sizes = [1, 32], strides = [1, 1]} : vector<8x32xf32> to vector<1x32xf32>
    %215 = arith.mulf %11, %213 : vector<1x32xf32>
    %216 = arith.addf %214, %215 : vector<1x32xf32>
    %cst_60 = arith.constant 5.000000e-01 : f32
    %217 = vector.broadcast %cst_60 : f32 to vector<1x32xf32>
    %218 = arith.mulf %217, %216 : vector<1x32xf32>
    %219 = math.tanh %218 : vector<1x32xf32>
    %cst_61 = arith.constant 5.000000e-01 : f32
    %220 = vector.broadcast %cst_61 : f32 to vector<1x32xf32>
    %221 = arith.mulf %220, %219 : vector<1x32xf32>
    %cst_62 = arith.constant 5.000000e-01 : f32
    %222 = vector.broadcast %cst_62 : f32 to vector<1x32xf32>
    %223 = arith.addf %221, %222 : vector<1x32xf32>
    %224 = vector.extract_strided_slice %7 {offsets = [5, 0], sizes = [1, 32], strides = [1, 1]} : vector<8x32xf32> to vector<1x32xf32>
    %225 = arith.mulf %12, %213 : vector<1x32xf32>
    %226 = arith.addf %224, %225 : vector<1x32xf32>
    %cst_63 = arith.constant 5.000000e-01 : f32
    %227 = vector.broadcast %cst_63 : f32 to vector<1x32xf32>
    %228 = arith.mulf %227, %226 : vector<1x32xf32>
    %229 = math.tanh %228 : vector<1x32xf32>
    %cst_64 = arith.constant 5.000000e-01 : f32
    %230 = vector.broadcast %cst_64 : f32 to vector<1x32xf32>
    %231 = arith.mulf %230, %229 : vector<1x32xf32>
    %cst_65 = arith.constant 5.000000e-01 : f32
    %232 = vector.broadcast %cst_65 : f32 to vector<1x32xf32>
    %233 = arith.addf %231, %232 : vector<1x32xf32>
    %234 = vector.extract_strided_slice %8 {offsets = [5, 0], sizes = [1, 32], strides = [1, 1]} : vector<8x32xf32> to vector<1x32xf32>
    %235 = arith.mulf %13, %213 : vector<1x32xf32>
    %236 = arith.addf %234, %235 : vector<1x32xf32>
    %cst_66 = arith.constant 5.000000e-01 : f32
    %237 = vector.broadcast %cst_66 : f32 to vector<1x32xf32>
    %238 = arith.mulf %237, %236 : vector<1x32xf32>
    %239 = math.tanh %238 : vector<1x32xf32>
    %cst_67 = arith.constant 5.000000e-01 : f32
    %240 = vector.broadcast %cst_67 : f32 to vector<1x32xf32>
    %241 = arith.mulf %240, %239 : vector<1x32xf32>
    %cst_68 = arith.constant 5.000000e-01 : f32
    %242 = vector.broadcast %cst_68 : f32 to vector<1x32xf32>
    %243 = arith.addf %241, %242 : vector<1x32xf32>
    %244 = vector.extract_strided_slice %9 {offsets = [5, 0], sizes = [1, 32], strides = [1, 1]} : vector<8x32xf32> to vector<1x32xf32>
    %245 = arith.mulf %14, %213 : vector<1x32xf32>
    %246 = arith.addf %244, %245 : vector<1x32xf32>
    %247 = math.tanh %246 : vector<1x32xf32>
    %248 = arith.mulf %223, %211 : vector<1x32xf32>
    %249 = arith.mulf %233, %247 : vector<1x32xf32>
    %250 = arith.addf %248, %249 : vector<1x32xf32>
    %251 = math.tanh %250 : vector<1x32xf32>
    %252 = arith.mulf %243, %251 : vector<1x32xf32>
    %253 = vector.extract_strided_slice %6 {offsets = [6, 0], sizes = [1, 32], strides = [1, 1]} : vector<8x32xf32> to vector<1x32xf32>
    %254 = arith.mulf %11, %252 : vector<1x32xf32>
    %255 = arith.addf %253, %254 : vector<1x32xf32>
    %cst_69 = arith.constant 5.000000e-01 : f32
    %256 = vector.broadcast %cst_69 : f32 to vector<1x32xf32>
    %257 = arith.mulf %256, %255 : vector<1x32xf32>
    %258 = math.tanh %257 : vector<1x32xf32>
    %cst_70 = arith.constant 5.000000e-01 : f32
    %259 = vector.broadcast %cst_70 : f32 to vector<1x32xf32>
    %260 = arith.mulf %259, %258 : vector<1x32xf32>
    %cst_71 = arith.constant 5.000000e-01 : f32
    %261 = vector.broadcast %cst_71 : f32 to vector<1x32xf32>
    %262 = arith.addf %260, %261 : vector<1x32xf32>
    %263 = vector.extract_strided_slice %7 {offsets = [6, 0], sizes = [1, 32], strides = [1, 1]} : vector<8x32xf32> to vector<1x32xf32>
    %264 = arith.mulf %12, %252 : vector<1x32xf32>
    %265 = arith.addf %263, %264 : vector<1x32xf32>
    %cst_72 = arith.constant 5.000000e-01 : f32
    %266 = vector.broadcast %cst_72 : f32 to vector<1x32xf32>
    %267 = arith.mulf %266, %265 : vector<1x32xf32>
    %268 = math.tanh %267 : vector<1x32xf32>
    %cst_73 = arith.constant 5.000000e-01 : f32
    %269 = vector.broadcast %cst_73 : f32 to vector<1x32xf32>
    %270 = arith.mulf %269, %268 : vector<1x32xf32>
    %cst_74 = arith.constant 5.000000e-01 : f32
    %271 = vector.broadcast %cst_74 : f32 to vector<1x32xf32>
    %272 = arith.addf %270, %271 : vector<1x32xf32>
    %273 = vector.extract_strided_slice %8 {offsets = [6, 0], sizes = [1, 32], strides = [1, 1]} : vector<8x32xf32> to vector<1x32xf32>
    %274 = arith.mulf %13, %252 : vector<1x32xf32>
    %275 = arith.addf %273, %274 : vector<1x32xf32>
    %cst_75 = arith.constant 5.000000e-01 : f32
    %276 = vector.broadcast %cst_75 : f32 to vector<1x32xf32>
    %277 = arith.mulf %276, %275 : vector<1x32xf32>
    %278 = math.tanh %277 : vector<1x32xf32>
    %cst_76 = arith.constant 5.000000e-01 : f32
    %279 = vector.broadcast %cst_76 : f32 to vector<1x32xf32>
    %280 = arith.mulf %279, %278 : vector<1x32xf32>
    %cst_77 = arith.constant 5.000000e-01 : f32
    %281 = vector.broadcast %cst_77 : f32 to vector<1x32xf32>
    %282 = arith.addf %280, %281 : vector<1x32xf32>
    %283 = vector.extract_strided_slice %9 {offsets = [6, 0], sizes = [1, 32], strides = [1, 1]} : vector<8x32xf32> to vector<1x32xf32>
    %284 = arith.mulf %14, %252 : vector<1x32xf32>
    %285 = arith.addf %283, %284 : vector<1x32xf32>
    %286 = math.tanh %285 : vector<1x32xf32>
    %287 = arith.mulf %262, %250 : vector<1x32xf32>
    %288 = arith.mulf %272, %286 : vector<1x32xf32>
    %289 = arith.addf %287, %288 : vector<1x32xf32>
    %290 = math.tanh %289 : vector<1x32xf32>
    %291 = arith.mulf %282, %290 : vector<1x32xf32>
    %292 = vector.extract_strided_slice %6 {offsets = [7, 0], sizes = [1, 32], strides = [1, 1]} : vector<8x32xf32> to vector<1x32xf32>
    %293 = arith.mulf %11, %291 : vector<1x32xf32>
    %294 = arith.addf %292, %293 : vector<1x32xf32>
    %cst_78 = arith.constant 5.000000e-01 : f32
    %295 = vector.broadcast %cst_78 : f32 to vector<1x32xf32>
    %296 = arith.mulf %295, %294 : vector<1x32xf32>
    %297 = math.tanh %296 : vector<1x32xf32>
    %cst_79 = arith.constant 5.000000e-01 : f32
    %298 = vector.broadcast %cst_79 : f32 to vector<1x32xf32>
    %299 = arith.mulf %298, %297 : vector<1x32xf32>
    %cst_80 = arith.constant 5.000000e-01 : f32
    %300 = vector.broadcast %cst_80 : f32 to vector<1x32xf32>
    %301 = arith.addf %299, %300 : vector<1x32xf32>
    %302 = vector.extract_strided_slice %7 {offsets = [7, 0], sizes = [1, 32], strides = [1, 1]} : vector<8x32xf32> to vector<1x32xf32>
    %303 = arith.mulf %12, %291 : vector<1x32xf32>
    %304 = arith.addf %302, %303 : vector<1x32xf32>
    %cst_81 = arith.constant 5.000000e-01 : f32
    %305 = vector.broadcast %cst_81 : f32 to vector<1x32xf32>
    %306 = arith.mulf %305, %304 : vector<1x32xf32>
    %307 = math.tanh %306 : vector<1x32xf32>
    %cst_82 = arith.constant 5.000000e-01 : f32
    %308 = vector.broadcast %cst_82 : f32 to vector<1x32xf32>
    %309 = arith.mulf %308, %307 : vector<1x32xf32>
    %cst_83 = arith.constant 5.000000e-01 : f32
    %310 = vector.broadcast %cst_83 : f32 to vector<1x32xf32>
    %311 = arith.addf %309, %310 : vector<1x32xf32>
    %312 = vector.extract_strided_slice %8 {offsets = [7, 0], sizes = [1, 32], strides = [1, 1]} : vector<8x32xf32> to vector<1x32xf32>
    %313 = arith.mulf %13, %291 : vector<1x32xf32>
    %314 = arith.addf %312, %313 : vector<1x32xf32>
    %cst_84 = arith.constant 5.000000e-01 : f32
    %315 = vector.broadcast %cst_84 : f32 to vector<1x32xf32>
    %316 = arith.mulf %315, %314 : vector<1x32xf32>
    %317 = math.tanh %316 : vector<1x32xf32>
    %cst_85 = arith.constant 5.000000e-01 : f32
    %318 = vector.broadcast %cst_85 : f32 to vector<1x32xf32>
    %319 = arith.mulf %318, %317 : vector<1x32xf32>
    %cst_86 = arith.constant 5.000000e-01 : f32
    %320 = vector.broadcast %cst_86 : f32 to vector<1x32xf32>
    %321 = arith.addf %319, %320 : vector<1x32xf32>
    %322 = vector.extract_strided_slice %9 {offsets = [7, 0], sizes = [1, 32], strides = [1, 1]} : vector<8x32xf32> to vector<1x32xf32>
    %323 = arith.mulf %14, %291 : vector<1x32xf32>
    %324 = arith.addf %322, %323 : vector<1x32xf32>
    %325 = math.tanh %324 : vector<1x32xf32>
    %326 = arith.mulf %301, %289 : vector<1x32xf32>
    %327 = arith.mulf %311, %325 : vector<1x32xf32>
    %328 = arith.addf %326, %327 : vector<1x32xf32>
    %329 = math.tanh %328 : vector<1x32xf32>
    %330 = arith.mulf %321, %329 : vector<1x32xf32>
    %331 = tpu.concatenate %17, %57, %96, %135, %174, %213, %252, %291, %330 in 0 : vector<1x32xf32>, vector<1x32xf32>, vector<1x32xf32>, vector<1x32xf32>, vector<1x32xf32>, vector<1x32xf32>, vector<1x32xf32>, vector<1x32xf32>, vector<1x32xf32> -> vector<9x32xf32>
    %332 = tpu.concatenate %18, %55, %94, %133, %172, %211, %250, %289, %328 in 0 : vector<1x32xf32>, vector<1x32xf32>, vector<1x32xf32>, vector<1x32xf32>, vector<1x32xf32>, vector<1x32xf32>, vector<1x32xf32>, vector<1x32xf32>, vector<1x32xf32> -> vector<9x32xf32>
    %c0_87 = arith.constant 0 : index
    %c0_88 = arith.constant 0 : index
    %333 = vector.load %arg9[%c0_87, %c0_88] : memref<9x32xf32, #tpu.memory_space<vmem>>, vector<9x32xf32>
    tpu.vector_store %arg9[%c0_87, %c0_88], %331 {strides = array<i32>} : memref<9x32xf32, #tpu.memory_space<vmem>>, vector<9x32xf32>,
    %c0_89 = arith.constant 0 : index
    %c0_90 = arith.constant 0 : index
    %334 = vector.load %arg10[%c0_89, %c0_90] : memref<9x32xf32, #tpu.memory_space<vmem>>, vector<9x32xf32>
    tpu.vector_store %arg10[%c0_89, %c0_90], %332 {strides = array<i32>} : memref<9x32xf32, #tpu.memory_space<vmem>>, vector<9x32xf32>,
    %335 = vector.extract_strided_slice %331 {offsets = [1, 0], sizes = [8, 32], strides = [1, 1]} : vector<9x32xf32> to vector<8x32xf32>
    %336 = vector.broadcast %15 : vector<1x32xf32> to vector<8x32xf32>
    %337 = arith.mulf %335, %336 : vector<8x32xf32>
    %cst_91 = arith.constant dense<0.000000e+00> : vector<8xf32>
    %338 = vector.multi_reduction <add>, %337, %cst_91 [1] : vector<8x32xf32> to vector<8xf32>
    %339 = vector.shape_cast %338 : vector<8xf32> to vector<8x1xf32>
    %340 = vector.broadcast %16 : f32 to vector<8x1xf32>
    %341 = arith.addf %339, %340 : vector<8x1xf32>
    %c0_92 = arith.constant 0 : index
    %c0_93 = arith.constant 0 : index
    %342 = vector.load %arg8[%c0_92, %c0_93] : memref<8x1xf32, #tpu.memory_space<vmem>>, vector<8x1xf32>
    tpu.vector_store %arg8[%c0_92, %c0_93], %341 {strides = array<i32>} : memref<8x1xf32, #tpu.memory_space<vmem>>, vector<8x1xf32>,
    return
  }
}

</mosaic_0001>

<bundles_post_ra>
// kernel: tpu_custom_call.1
= control target key start
LH: loop header
LB: loop body
LE: loop exit
PB: predicated region body
PF: predicated region fallthrough
CT: control target
= control target key end

     0   :  { %17 = vsyncpa [#allocation4], 0  ;;  %vm45_vm0 = vcmask 1043456   ;;  %vm41_vm1 = vcmask 31744   ;;  %s904_s19 = smov 96   ;;  %s1251_s0 = inlined_call_operand.vmem [shape: f32[8,4], index: 0, kind: input, shape index: {}]   ;;  %s1252_s1 = inlined_call_operand.vmem [shape: f32[4,128], index: 1, kind: input, shape index: {}]   ;;  %s1253_s2 = inlined_call_operand.vmem [shape: f32[1,128], index: 2, kind: input, shape index: {}]   ;;  %s1254_s3 = inlined_call_operand.vmem [shape: f32[1,128], index: 3, kind: input, shape index: {}]   ;;  %s1255_s4 = inlined_call_operand.vmem [shape: f32[1,32], index: 4, kind: input, shape index: {}]   ;;  %s1256_s5 = inlined_call_operand.vmem [shape: f32[1,32], index: 5, kind: input, shape index: {}]   ;;  %s1257_s6 = inlined_call_operand.vmem [shape: f32[1,32], index: 6, kind: input, shape index: {}]   ;;  %s1258_s7 = inlined_call_operand.<no memory space> [shape: f32[1,1], index: 7, kind: input, shape index: {}]   ;;  %s1259_s8 = inlined_call_operand.vmem [shape: f32[8,1], index: 8, kind: output, shape index: {0}]   ;;  %s1260_s9 = inlined_call_operand.hbm [shape: f32[9,32], index: 9, kind: output, shape index: {1}]   ;;  %s1261_s10 = inlined_call_operand.hbm [shape: f32[9,32], index: 10, kind: output, shape index: {2}]  }
   0x1   :  { %v36_v0 = vld [vmem:[%s1252_s1] sm:$0xf] }
   0x2   :  { %v35_v1 = vld [vmem:[%s1251_s0] sm:$0xff]  ;;  %762 = vmatpush.msk.msra.mxu0 %vm45_vm0, %v36_v0 }
   0x3   :  { %v976_v2 = vld [vmem:[%s1255_s4] sm:$0x1]  ;;  %763 = vmatmul.msk.f32.vlgmr.msra.gmra.mxu0 %vm41_vm1, %v35_v1 }
   0x4   :  { %99 = vrot.lane.b32.xlu0 %v976_v2, %s904_s19 }
   0x5   :  { %18 = vsyncpa [#allocation6], 0  ;;  %s905_s1 = smov 64   ;;  %s906_s20 = smov 32   ;;  %v987_v3 = vld [vmem:[%s1253_s2] sm:$0x1] }
   0x6   :  { %90 = vrot.lane.b32.xlu2 %v976_v2, %s905_s1  ;;  %v771_v4 = vld [vmem:[%s1254_s3] ss:$0 sm:$0xff]  ;;  %v74_v20 = vmul.f32 %v976_v2, %v987_v3  ;;  %vm674_vm2 = vcmask 1040384   ;;  %vm676_vm3 = vcmask 1041408   ;;  %vm678_vm4 = vcmask 1042432   ;;  %s907_s24 = smov [#allocation3]  }
   0x7   :  { %v1006_v26 = vld [vmem:[%s1256_s5] sm:$0x1]  ;;  %vm681_vm5 = vcmask 1044480   ;;  %vm683_vm6 = vcmask 1045504   ;;  %vm685_vm7 = vcmask 1046528   ;;  %vm697_vm8 = vcmask 261120  }
   0x8   :  { %vm699_vm9 = vcmask 253952   ;;  %vm708_vm10 = vcmask 261121   ;;  %s730_s27 = sshll.u32 %s1260_s9, 4  ;;  %s908_s28 = smov [#allocation5]   ;;  %vm718_vm11 = vcmask 7169   ;;  %vm720_vm12 = vcmask 0   ;;  %s731_s27 = int_to_ptr.hbm [resolvable:$true] %s730_s27 }
   0x9   :  { %s741_s29 = sshll.u32 %s908_s28, 4  ;;  %s743_s12 = sshll.u32 %s1261_s10, 4  ;;  %s742_s29 = int_to_ptr.vmem [resolvable:$true] %s741_s29  ;;  %s744_s12 = int_to_ptr.hbm [resolvable:$true] %s743_s12 }
   0xa   :  { %s909_s13 = smov 128   ;;  %s910_s14 = smov 8  }
   0xc   :  { %81 = vrot.lane.b32.xlu0 %v976_v2, %s906_s20 }
  0x60   :  { %v91_v31 = vpop.permute.xlu2 %90 }
  0x61   :  { %v93_v32 = vmul.f32 %v91_v31, %v987_v3 }
  0x76   :  { %v100_v5 = vpop.permute.xlu0 %99 }
  0x77   :  { %v102_v6 = vmul.f32 %v100_v5, %v987_v3 }
  0x7e   :  { %v82_v11 = vpop.permute.xlu0 %81 }
  0x7f   :  { %v84_v12 = vmul.f32 %v82_v11, %v987_v3 }
  0x80   :  { %v66_v7 = vpop.f32.mrf.mxu0 }
  0x81   :  { %v993_v8 = vadd.f32 %v771_v4, %v66_v7 }
  0x83   :  { %v103_v9 = vadd.f32 %v102_v6, %v993_v8  ;;  %v85_v13 = vadd.f32 %v84_v12, %v993_v8  ;;  %v75_v21 = vadd.f32 %v74_v20, %v993_v8  ;;  %v94_v33 = vadd.f32 %v93_v32, %v993_v8 }
  0x85   :  { %772 = vtanh.f32 %v103_v9  ;;  %v86_v14 = vmul.f32 0.5, %v85_v13  ;;  %v76_v22 = vmul.f32 0.5, %v75_v21  ;;  %v95_v34 = vmul.f32 0.5, %v94_v33 }
  0x87   :  { %774 = vtanh.f32 %v86_v14 }
  0x88   :  { %776 = vtanh.f32 %v76_v22 }
  0x8b   :  { %v773_v10 = vpop.eup %772 }
  0x8c   :  { %107 = vrot.lane.b32.xlu1 %v773_v10, %s905_s1 }
  0x8d   :  { %v775_v15 = vpop.eup %774 }
  0x8e   :  { %v88_v16 = vmul.f32 0.5, %v775_v15  ;;  %v777_v23 = vpop.eup %776 }
  0x8f   :  { %v78_v24 = vmul.f32 0.5, %v777_v23 }
  0x90   :  { %v89_v17 = vadd.f32 0.5, %v88_v16 }
  0x91   :  { %v79_v25 = vadd.f32 0.5, %v78_v24 }
  0x93   :  { %v105_v27 = vmul.f32 %v79_v25, %v1006_v26 }
  0xfe   :  { %v108_v18 = vpop.permute.xlu1 %107 }
  0xff   :  { %v110_v19 = vmul.f32 %v108_v18, %v89_v17 }
 0x101   :  { %112 = vrot.lane.b32.xlu1 %v110_v19, %s904_s19 }
 0x173   :  { %v113_v28 = vpop.permute.xlu1 %112 }
 0x174   :  { %v1009_v29 = vadd.f32 %v113_v28, %v105_v27 }
 0x176   :  { %778 = vtanh.f32 %v1009_v29  ;;  %v166_v63 = vrot.slane %v1009_v29, 7 }
 0x177   :  { %780 = vtanh.f32 %v95_v34 }
 0x17c   :  { %v779_v30 = vpop.eup %778 }
 0x17d   :  { %118 = vrot.lane.b32.xlu2 %v779_v30, %s905_s1  ;;  %v781_v35 = vpop.eup %780 }
 0x17e   :  { %v97_v36 = vmul.f32 0.5, %v781_v35 }
 0x180   :  { %v98_v37 = vadd.f32 0.5, %v97_v36 }
 0x1d7   :  { %v119_v38 = vpop.permute.xlu2 %118 }
 0x1d8   :  { %v1015_v39 = vmul.f32 %v119_v38, %v98_v37 }
 0x1da   :  { %135 = vrot.lane.b32.xlu1 %v1015_v39, %s904_s19  ;;  %156 = vrot.lane.b32.xlu0 %v1015_v39, %s906_s20  ;;  %v147_v6 = vmul.f32 %v1015_v39, %v987_v3 }
 0x1dc   :  { %v149_v7 = vperm.slane %v147_v6, 0 }
 0x1de   :  { %v151_v9 = vadd.f32 %v149_v7, %v993_v8 }
 0x1e0   :  { %v152_v10 = vmul.f32 0.5, %v151_v9 }
 0x1e2   :  { %123 = vrot.lane.b32.xlu0 %v1015_v39, %s905_s1 }
 0x24c   :  { %v157_v40 = vpop.permute.xlu0 %156  ;;  %v136_v45 = vpop.permute.xlu1 %135 }
 0x24d   :  { %v159_v41 = vmul.f32 %v157_v40, %v987_v3  ;;  %v138_v46 = vmul.f32 %v136_v45, %v987_v3 }
 0x24f   :  { %v161_v42 = vperm.slane %v159_v41, 0  ;;  %v140_v47 = vperm.slane %v138_v46, 0 }
 0x251   :  { %v163_v43 = vadd.f32 %v161_v42, %v993_v8  ;;  %v142_v48 = vadd.f32 %v140_v47, %v993_v8 }
 0x253   :  { %782 = vtanh.f32 %v163_v43  ;;  %v143_v49 = vmul.f32 0.5, %v142_v48 }
 0x254   :  { %v124_v55 = vpop.permute.xlu0 %123 }
 0x255   :  { %784 = vtanh.f32 %v143_v49  ;;  %v126_v56 = vmul.f32 %v124_v55, %v987_v3 }
 0x257   :  { %v128_v57 = vperm.slane %v126_v56, 0 }
 0x259   :  { %v783_v44 = vpop.eup %782  ;;  %v130_v58 = vadd.f32 %v128_v57, %v993_v8 }
 0x25a   :  { %170 = vrot.lane.b32.xlu2 %v783_v44, %s905_s1 }
 0x25b   :  { %v785_v50 = vpop.eup %784  ;;  %v131_v59 = vmul.f32 0.5, %v130_v58 }
 0x25c   :  { %v145_v51 = vmul.f32 0.5, %v785_v50 }
 0x25d   :  { %786 = vtanh.f32 %v131_v59 }
 0x25e   :  { %v146_v52 = vadd.f32 0.5, %v145_v51 }
 0x263   :  { %v787_v60 = vpop.eup %786 }
 0x264   :  { %v133_v61 = vmul.f32 0.5, %v787_v60 }
 0x266   :  { %v134_v62 = vadd.f32 0.5, %v133_v61 }
 0x268   :  { %v168_v0 = vmul.f32 %v166_v63, %v134_v62 }
 0x2b4   :  { %v171_v53 = vpop.permute.xlu2 %170 }
 0x2b5   :  { %v173_v54 = vmul.f32 %v171_v53, %v146_v52 }
 0x2b7   :  { %175 = vrot.lane.b32.xlu1 %v173_v54, %s904_s19 }
 0x329   :  { %v176_v1 = vpop.permute.xlu1 %175 }
 0x32a   :  { %v1034_v4 = vadd.f32 %v176_v1, %v168_v0 }
 0x32c   :  { %788 = vtanh.f32 %v1034_v4  ;;  %v242_v46 = vrot.slane %v1034_v4, 7 }
 0x32d   :  { %790 = vtanh.f32 %v152_v10 }
 0x332   :  { %v789_v5 = vpop.eup %788 }
 0x333   :  { %181 = vrot.lane.b32.xlu2 %v789_v5, %s905_s1  ;;  %v791_v11 = vpop.eup %790 }
 0x334   :  { %v154_v12 = vmul.f32 0.5, %v791_v11 }
 0x336   :  { %v155_v13 = vadd.f32 0.5, %v154_v12 }
 0x38d   :  { %v182_v14 = vpop.permute.xlu2 %181 }
 0x38e   :  { %v1041_v15 = vmul.f32 %v182_v14, %v155_v13 }
 0x390   :  { %186 = vst [vmem:[#allocation1] sm:$0xff] %v1041_v15 }
 0x397   :  { %v188_v16 = vld [vmem:[#allocation1 + $0x1] ss:$9 sm:$0xff] }
 0x398   :  { %201 = vst [vmem:[#allocation1] sm:$0xff] %v1041_v15 }
 0x39f   :  { %v203_v17 = vld [vmem:[#allocation1 + $0x1] ss:$9 sm:$0xff] }
 0x3a0   :  { %216 = vst [vmem:[#allocation1] sm:$0xff] %v1041_v15  ;;  %204 = vrot.lane.b32.xlu1 %v203_v17, %s904_s19 }
 0x3a7   :  { %v218_v18 = vld [vmem:[#allocation1 + $0x1] ss:$9 sm:$0xff] }
 0x3a8   :  { %229 = vst [vmem:[#allocation1] sm:$0xff] %v1041_v15  ;;  %v220_v51 = vmul.f32 %v218_v18, %v987_v3 }
 0x3aa   :  { %v222_v52 = vperm.slane %v220_v51, 0 }
 0x3ac   :  { %v224_v53 = vadd.f32 %v222_v52, %v993_v8 }
 0x3ae   :  { %v225_v54 = vmul.f32 0.5, %v224_v53 }
 0x3af   :  { %v231_v19 = vld [vmem:[#allocation1 + $0x1] ss:$9 sm:$0xff] }
 0x3b0   :  { %232 = vrot.lane.b32.xlu0 %v231_v19, %s906_s20 }
 0x3b8   :  { %189 = vrot.lane.b32.xlu0 %v188_v16, %s905_s1 }
 0x412   :  { %v205_v25 = vpop.permute.xlu1 %204 }
 0x413   :  { %v207_v27 = vmul.f32 %v205_v25, %v987_v3 }
 0x415   :  { %v209_v28 = vperm.slane %v207_v27, 0 }
 0x417   :  { %v211_v30 = vadd.f32 %v209_v28, %v993_v8 }
 0x419   :  { %v212_v31 = vmul.f32 0.5, %v211_v30 }
 0x422   :  { %v233_v20 = vpop.permute.xlu0 %232 }
 0x423   :  { %v235_v21 = vmul.f32 %v233_v20, %v987_v3 }
 0x425   :  { %v237_v22 = vperm.slane %v235_v21, 0 }
 0x427   :  { %v239_v23 = vadd.f32 %v237_v22, %v993_v8 }
 0x429   :  { %792 = vtanh.f32 %v239_v23 }
 0x42a   :  { %794 = vtanh.f32 %v212_v31  ;;  %v190_v37 = vpop.permute.xlu0 %189 }
 0x42b   :  { %v192_v38 = vmul.f32 %v190_v37, %v987_v3 }
 0x42d   :  { %v194_v40 = vperm.slane %v192_v38, 0 }
 0x42f   :  { %v793_v24 = vpop.eup %792  ;;  %v196_v41 = vadd.f32 %v194_v40, %v993_v8 }
 0x430   :  { %246 = vrot.lane.b32.xlu2 %v793_v24, %s905_s1  ;;  %v795_v32 = vpop.eup %794 }
 0x431   :  { %v214_v33 = vmul.f32 0.5, %v795_v32  ;;  %v197_v42 = vmul.f32 0.5, %v196_v41 }
 0x433   :  { %v215_v34 = vadd.f32 0.5, %v214_v33  ;;  %796 = vtanh.f32 %v197_v42 }
 0x439   :  { %v797_v43 = vpop.eup %796 }
 0x43a   :  { %v199_v44 = vmul.f32 0.5, %v797_v43 }
 0x43c   :  { %v200_v45 = vadd.f32 0.5, %v199_v44 }
 0x43e   :  { %v244_v47 = vmul.f32 %v242_v46, %v200_v45 }
 0x48a   :  { %v247_v35 = vpop.permute.xlu2 %246 }
 0x48b   :  { %v249_v36 = vmul.f32 %v247_v35, %v215_v34 }
 0x48d   :  { %251 = vrot.lane.b32.xlu1 %v249_v36, %s904_s19 }
 0x4ff   :  { %v252_v48 = vpop.permute.xlu1 %251 }
 0x500   :  { %v1061_v49 = vadd.f32 %v252_v48, %v244_v47 }
 0x502   :  { %798 = vtanh.f32 %v1061_v49  ;;  %v318_v31 = vrot.slane %v1061_v49, 7 }
 0x503   :  { %800 = vtanh.f32 %v225_v54 }
 0x508   :  { %v799_v50 = vpop.eup %798 }
 0x509   :  { %257 = vrot.lane.b32.xlu2 %v799_v50, %s905_s1  ;;  %v801_v55 = vpop.eup %800 }
 0x50a   :  { %v227_v56 = vmul.f32 0.5, %v801_v55 }
 0x50c   :  { %v228_v57 = vadd.f32 0.5, %v227_v56 }
 0x563   :  { %v258_v58 = vpop.permute.xlu2 %257 }
 0x564   :  { %v1067_v59 = vmul.f32 %v258_v58, %v228_v57 }
 0x566   :  { %262 = vst [vmem:[#allocation1] sm:$0xff] %v1067_v59 }
 0x56d   :  { %v264_v60 = vld [vmem:[#allocation1 + $0x2] ss:$9 sm:$0xff] }
 0x56e   :  { %277 = vst [vmem:[#allocation1] sm:$0xff] %v1067_v59 }
 0x575   :  { %v279_v61 = vld [vmem:[#allocation1 + $0x2] ss:$9 sm:$0xff] }
 0x576   :  { %292 = vst [vmem:[#allocation1] sm:$0xff] %v1067_v59  ;;  %280 = vrot.lane.b32.xlu1 %v279_v61, %s904_s19 }
 0x57d   :  { %v294_v62 = vld [vmem:[#allocation1 + $0x2] ss:$9 sm:$0xff] }
 0x57e   :  { %305 = vst [vmem:[#allocation1] sm:$0xff] %v1067_v59  ;;  %v296_v36 = vmul.f32 %v294_v62, %v987_v3 }
 0x580   :  { %v298_v37 = vperm.slane %v296_v36, 0 }
 0x582   :  { %v300_v38 = vadd.f32 %v298_v37, %v993_v8 }
 0x584   :  { %v301_v40 = vmul.f32 0.5, %v300_v38 }
 0x585   :  { %v307_v0 = vld [vmem:[#allocation1 + $0x2] ss:$9 sm:$0xff] }
 0x586   :  { %308 = vrot.lane.b32.xlu0 %v307_v0, %s906_s20 }
 0x58e   :  { %265 = vrot.lane.b32.xlu0 %v264_v60, %s905_s1 }
 0x5e8   :  { %v281_v10 = vpop.permute.xlu1 %280 }
 0x5e9   :  { %v283_v11 = vmul.f32 %v281_v10, %v987_v3 }
 0x5eb   :  { %v285_v12 = vperm.slane %v283_v11, 0 }
 0x5ed   :  { %v287_v13 = vadd.f32 %v285_v12, %v993_v8 }
 0x5ef   :  { %v288_v14 = vmul.f32 0.5, %v287_v13 }
 0x5f8   :  { %v309_v1 = vpop.permute.xlu0 %308 }
 0x5f9   :  { %v311_v5 = vmul.f32 %v309_v1, %v987_v3 }
 0x5fb   :  { %v313_v6 = vperm.slane %v311_v5, 0 }
 0x5fd   :  { %v315_v7 = vadd.f32 %v313_v6, %v993_v8 }
 0x5ff   :  { %802 = vtanh.f32 %v315_v7 }
 0x600   :  { %804 = vtanh.f32 %v288_v14  ;;  %v266_v21 = vpop.permute.xlu0 %265 }
 0x601   :  { %v268_v22 = vmul.f32 %v266_v21, %v987_v3 }
 0x603   :  { %v270_v23 = vperm.slane %v268_v22, 0 }
 0x605   :  { %v803_v9 = vpop.eup %802  ;;  %v272_v24 = vadd.f32 %v270_v23, %v993_v8 }
 0x606   :  { %322 = vrot.lane.b32.xlu2 %v803_v9, %s905_s1  ;;  %v805_v16 = vpop.eup %804 }
 0x607   :  { %v290_v17 = vmul.f32 0.5, %v805_v16  ;;  %v273_v25 = vmul.f32 0.5, %v272_v24 }
 0x609   :  { %v291_v18 = vadd.f32 0.5, %v290_v17  ;;  %806 = vtanh.f32 %v273_v25 }
 0x60f   :  { %v807_v27 = vpop.eup %806 }
 0x610   :  { %v275_v28 = vmul.f32 0.5, %v807_v27 }
 0x612   :  { %v276_v30 = vadd.f32 0.5, %v275_v28 }
 0x614   :  { %v320_v32 = vmul.f32 %v318_v31, %v276_v30 }
 0x660   :  { %v323_v19 = vpop.permute.xlu2 %322 }
 0x661   :  { %v325_v20 = vmul.f32 %v323_v19, %v291_v18 }
 0x663   :  { %327 = vrot.lane.b32.xlu1 %v325_v20, %s904_s19 }
 0x6d5   :  { %v328_v33 = vpop.permute.xlu1 %327 }
 0x6d6   :  { %v1087_v34 = vadd.f32 %v328_v33, %v320_v32 }
 0x6d8   :  { %808 = vtanh.f32 %v1087_v34  ;;  %v394_v18 = vrot.slane %v1087_v34, 7 }
 0x6d9   :  { %810 = vtanh.f32 %v301_v40 }
 0x6de   :  { %v809_v35 = vpop.eup %808 }
 0x6df   :  { %333 = vrot.lane.b32.xlu2 %v809_v35, %s905_s1  ;;  %v811_v41 = vpop.eup %810 }
 0x6e0   :  { %v303_v42 = vmul.f32 0.5, %v811_v41 }
 0x6e2   :  { %v304_v43 = vadd.f32 0.5, %v303_v42 }
 0x739   :  { %v334_v44 = vpop.permute.xlu2 %333 }
 0x73a   :  { %v1093_v45 = vmul.f32 %v334_v44, %v304_v43 }
 0x73c   :  { %338 = vst [vmem:[#allocation1] sm:$0xff] %v1093_v45 }
 0x743   :  { %v340_v47 = vld [vmem:[#allocation1 + $0x3] ss:$9 sm:$0xff] }
 0x744   :  { %353 = vst [vmem:[#allocation1] sm:$0xff] %v1093_v45 }
 0x74b   :  { %v355_v48 = vld [vmem:[#allocation1 + $0x3] ss:$9 sm:$0xff] }
 0x74c   :  { %356 = vrot.lane.b32.xlu1 %v355_v48, %s904_s19  ;;  %368 = vst [vmem:[#allocation1] sm:$0xff] %v1093_v45 }
 0x753   :  { %v370_v50 = vld [vmem:[#allocation1 + $0x3] ss:$9 sm:$0xff] }
 0x754   :  { %381 = vst [vmem:[#allocation1] sm:$0xff] %v1093_v45  ;;  %v372_v23 = vmul.f32 %v370_v50, %v987_v3 }
 0x756   :  { %v374_v24 = vperm.slane %v372_v23, 0 }
 0x758   :  { %v376_v25 = vadd.f32 %v374_v24, %v993_v8 }
 0x75a   :  { %v377_v27 = vmul.f32 0.5, %v376_v25 }
 0x75b   :  { %v383_v51 = vld [vmem:[#allocation1 + $0x3] ss:$9 sm:$0xff] }
 0x75c   :  { %384 = vrot.lane.b32.xlu0 %v383_v51, %s906_s20 }
 0x764   :  { %341 = vrot.lane.b32.xlu0 %v340_v47, %s905_s1 }
 0x7be   :  { %v357_v57 = vpop.permute.xlu1 %356 }
 0x7bf   :  { %v359_v58 = vmul.f32 %v357_v57, %v987_v3 }
 0x7c1   :  { %v361_v60 = vperm.slane %v359_v58, 0 }
 0x7c3   :  { %v363_v61 = vadd.f32 %v361_v60, %v993_v8 }
 0x7c5   :  { %v364_v62 = vmul.f32 0.5, %v363_v61 }
 0x7ce   :  { %v385_v52 = vpop.permute.xlu0 %384 }
 0x7cf   :  { %v387_v53 = vmul.f32 %v385_v52, %v987_v3 }
 0x7d1   :  { %v389_v54 = vperm.slane %v387_v53, 0 }
 0x7d3   :  { %v391_v55 = vadd.f32 %v389_v54, %v993_v8 }
 0x7d5   :  { %812 = vtanh.f32 %v391_v55 }
 0x7d6   :  { %814 = vtanh.f32 %v364_v62  ;;  %v342_v9 = vpop.permute.xlu0 %341 }
 0x7d7   :  { %v344_v10 = vmul.f32 %v342_v9, %v987_v3 }
 0x7d9   :  { %v346_v11 = vperm.slane %v344_v10, 0 }
 0x7db   :  { %v813_v56 = vpop.eup %812  ;;  %v348_v12 = vadd.f32 %v346_v11, %v993_v8 }
 0x7dc   :  { %398 = vrot.lane.b32.xlu2 %v813_v56, %s905_s1  ;;  %v815_v0 = vpop.eup %814 }
 0x7dd   :  { %v366_v1 = vmul.f32 0.5, %v815_v0  ;;  %v349_v13 = vmul.f32 0.5, %v348_v12 }
 0x7df   :  { %v367_v5 = vadd.f32 0.5, %v366_v1  ;;  %816 = vtanh.f32 %v349_v13 }
 0x7e5   :  { %v817_v14 = vpop.eup %816 }
 0x7e6   :  { %v351_v16 = vmul.f32 0.5, %v817_v14 }
 0x7e8   :  { %v352_v17 = vadd.f32 0.5, %v351_v16 }
 0x7ea   :  { %v396_v19 = vmul.f32 %v394_v18, %v352_v17 }
 0x836   :  { %v399_v6 = vpop.permute.xlu2 %398 }
 0x837   :  { %v401_v7 = vmul.f32 %v399_v6, %v367_v5 }
 0x839   :  { %403 = vrot.lane.b32.xlu1 %v401_v7, %s904_s19 }
 0x8ab   :  { %v404_v20 = vpop.permute.xlu1 %403 }
 0x8ac   :  { %v1113_v21 = vadd.f32 %v404_v20, %v396_v19 }
 0x8ae   :  { %818 = vtanh.f32 %v1113_v21  ;;  %v470_v9 = vrot.slane %v1113_v21, 7 }
 0x8af   :  { %820 = vtanh.f32 %v377_v27 }
 0x8b4   :  { %v819_v22 = vpop.eup %818 }
 0x8b5   :  { %409 = vrot.lane.b32.xlu2 %v819_v22, %s905_s1  ;;  %v821_v28 = vpop.eup %820 }
 0x8b6   :  { %v379_v30 = vmul.f32 0.5, %v821_v28 }
 0x8b8   :  { %v380_v32 = vadd.f32 0.5, %v379_v30 }
 0x90f   :  { %v410_v33 = vpop.permute.xlu2 %409 }
 0x910   :  { %v1119_v35 = vmul.f32 %v410_v33, %v380_v32 }
 0x912   :  { %414 = vst [vmem:[#allocation1] sm:$0xff] %v1119_v35 }
 0x919   :  { %v416_v36 = vld [vmem:[#allocation1 + $0x4] ss:$9 sm:$0xff] }
 0x91a   :  { %429 = vst [vmem:[#allocation1] sm:$0xff] %v1119_v35 }
 0x921   :  { %v431_v37 = vld [vmem:[#allocation1 + $0x4] ss:$9 sm:$0xff] }
 0x922   :  { %432 = vrot.lane.b32.xlu1 %v431_v37, %s904_s19  ;;  %444 = vst [vmem:[#allocation1] sm:$0xff] %v1119_v35 }
 0x929   :  { %v446_v38 = vld [vmem:[#allocation1 + $0x4] ss:$9 sm:$0xff] }
 0x92a   :  { %457 = vst [vmem:[#allocation1] sm:$0xff] %v1119_v35  ;;  %v448_v14 = vmul.f32 %v446_v38, %v987_v3 }
 0x92c   :  { %v450_v16 = vperm.slane %v448_v14, 0 }
 0x92e   :  { %v452_v17 = vadd.f32 %v450_v16, %v993_v8 }
 0x930   :  { %v453_v19 = vmul.f32 0.5, %v452_v17 }
 0x931   :  { %v459_v40 = vld [vmem:[#allocation1 + $0x4] ss:$9 sm:$0xff] }
 0x932   :  { %460 = vrot.lane.b32.xlu0 %v459_v40, %s906_s20 }
 0x93a   :  { %417 = vrot.lane.b32.xlu0 %v416_v36, %s905_s1 }
 0x994   :  { %v433_v48 = vpop.permute.xlu1 %432 }
 0x995   :  { %v435_v50 = vmul.f32 %v433_v48, %v987_v3 }
 0x997   :  { %v437_v51 = vperm.slane %v435_v50, 0 }
 0x999   :  { %v439_v52 = vadd.f32 %v437_v51, %v993_v8 }
 0x99b   :  { %v440_v53 = vmul.f32 0.5, %v439_v52 }
 0x9a4   :  { %v461_v41 = vpop.permute.xlu0 %460 }
 0x9a5   :  { %v463_v42 = vmul.f32 %v461_v41, %v987_v3 }
 0x9a7   :  { %v465_v43 = vperm.slane %v463_v42, 0 }
 0x9a9   :  { %v467_v44 = vadd.f32 %v465_v43, %v993_v8 }
 0x9ab   :  { %822 = vtanh.f32 %v467_v44 }
 0x9ac   :  { %824 = vtanh.f32 %v440_v53  ;;  %v418_v60 = vpop.permute.xlu0 %417 }
 0x9ad   :  { %v420_v61 = vmul.f32 %v418_v60, %v987_v3 }
 0x9af   :  { %v422_v62 = vperm.slane %v420_v61, 0 }
 0x9b1   :  { %v823_v47 = vpop.eup %822  ;;  %v424_v0 = vadd.f32 %v422_v62, %v993_v8 }
 0x9b2   :  { %474 = vrot.lane.b32.xlu2 %v823_v47, %s905_s1  ;;  %v825_v54 = vpop.eup %824 }
 0x9b3   :  { %v442_v55 = vmul.f32 0.5, %v825_v54  ;;  %v425_v1 = vmul.f32 0.5, %v424_v0 }
 0x9b5   :  { %v443_v56 = vadd.f32 0.5, %v442_v55  ;;  %826 = vtanh.f32 %v425_v1 }
 0x9bb   :  { %v827_v5 = vpop.eup %826 }
 0x9bc   :  { %v427_v6 = vmul.f32 0.5, %v827_v5  ;;  %v690_v5 = vsel %vm674_vm2, %v1006_v26, %v166_v63 }
 0x9be   :  { %v428_v7 = vadd.f32 0.5, %v427_v6 }
 0x9c0   :  { %v472_v10 = vmul.f32 %v470_v9, %v428_v7  ;;  %v691_v7 = vsel %vm676_vm3, %v690_v5, %v242_v46 }
 0xa0c   :  { %v475_v57 = vpop.permute.xlu2 %474 }
 0xa0d   :  { %v477_v58 = vmul.f32 %v475_v57, %v443_v56 }
 0xa0f   :  { %479 = vrot.lane.b32.xlu1 %v477_v58, %s904_s19 }
 0xa81   :  { %v480_v11 = vpop.permute.xlu1 %479 }
 0xa82   :  { %v1139_v12 = vadd.f32 %v480_v11, %v472_v10  ;;  %v692_v11 = vsel %vm678_vm4, %v691_v7, %v318_v31 }
 0xa83   :  { %v693_v29 = vsel %vm45_vm0, %v692_v11, %v394_v18 }
 0xa84   :  { %828 = vtanh.f32 %v1139_v12  ;;  %v546_v0 = vrot.slane %v1139_v12, 7  ;;  %v694_v63 = vsel %vm681_vm5, %v693_v29, %v470_v9 }
 0xa85   :  { %830 = vtanh.f32 %v453_v19 }
 0xa86   :  { %v695_v4 = vsel %vm683_vm6, %v694_v63, %v546_v0 }
 0xa8a   :  { %v829_v13 = vpop.eup %828 }
 0xa8b   :  { %485 = vrot.lane.b32.xlu2 %v829_v13, %s905_s1  ;;  %v831_v20 = vpop.eup %830 }
 0xa8c   :  { %v455_v22 = vmul.f32 0.5, %v831_v20 }
 0xa8e   :  { %v456_v23 = vadd.f32 0.5, %v455_v22 }
 0xae5   :  { %v486_v24 = vpop.permute.xlu2 %485 }
 0xae6   :  { %v1145_v25 = vmul.f32 %v486_v24, %v456_v23  ;;  %v641_v23 = vrot.slane %v1015_v39, 7  ;;  %v653_v24 = vrot.slane %v1093_v45, 7 }
 0xae8   :  { %490 = vst [vmem:[#allocation1] sm:$0xff] %v1145_v25 }
 0xaef   :  { %v492_v27 = vld [vmem:[#allocation1 + $0x5] ss:$9 sm:$0xff] }
 0xaf0   :  { %505 = vst [vmem:[#allocation1] sm:$0xff] %v1145_v25 }
 0xaf7   :  { %v507_v28 = vld [vmem:[#allocation1 + $0x5] ss:$9 sm:$0xff] }
 0xaf8   :  { %508 = vrot.lane.b32.xlu1 %v507_v28, %s904_s19  ;;  %520 = vst [vmem:[#allocation1] sm:$0xff] %v1145_v25 }
 0xaff   :  { %v522_v30 = vld [vmem:[#allocation1 + $0x5] ss:$9 sm:$0xff] }
 0xb00   :  { %533 = vst [vmem:[#allocation1] sm:$0xff] %v1145_v25  ;;  %v524_v31 = vmul.f32 %v522_v30, %v987_v3 }
 0xb02   :  { %v526_v34 = vperm.slane %v524_v31, 0 }
 0xb04   :  { %v528_v18 = vadd.f32 %v526_v34, %v993_v8 }
 0xb06   :  { %v529_v21 = vmul.f32 0.5, %v528_v18  ;;  %v70_v18 = vld [vmem:[%s1257_s6] sm:$0x1]  ;;  %s728_s6 = sshll.u32 %s907_s24, 4  ;;  %s729_s6 = int_to_ptr.vmem [resolvable:$true] %s728_s6 }
 0xb07   :  { %v535_v32 = vld [vmem:[#allocation1 + $0x5] ss:$9 sm:$0xff] }
 0xb08   :  { %536 = vrot.lane.b32.xlu0 %v535_v32, %s906_s20 }
 0xb10   :  { %493 = vrot.lane.b32.xlu0 %v492_v27, %s905_s1 }
 0xb6a   :  { %v509_v41 = vpop.permute.xlu1 %508 }
 0xb6b   :  { %v511_v42 = vmul.f32 %v509_v41, %v987_v3 }
 0xb6d   :  { %v513_v43 = vperm.slane %v511_v42, 0 }
 0xb6f   :  { %v515_v44 = vadd.f32 %v513_v43, %v993_v8 }
 0xb71   :  { %v516_v47 = vmul.f32 0.5, %v515_v44 }
 0xb7a   :  { %v537_v33 = vpop.permute.xlu0 %536 }
 0xb7b   :  { %v539_v36 = vmul.f32 %v537_v33, %v987_v3 }
 0xb7d   :  { %v541_v37 = vperm.slane %v539_v36, 0 }
 0xb7f   :  { %v543_v38 = vadd.f32 %v541_v37, %v993_v8 }
 0xb81   :  { %832 = vtanh.f32 %v543_v38 }
 0xb82   :  { %834 = vtanh.f32 %v516_v47  ;;  %v494_v54 = vpop.permute.xlu0 %493 }
 0xb83   :  { %v496_v55 = vmul.f32 %v494_v54, %v987_v3 }
 0xb85   :  { %v498_v56 = vperm.slane %v496_v55, 0 }
 0xb87   :  { %v833_v40 = vpop.eup %832  ;;  %v500_v57 = vadd.f32 %v498_v56, %v993_v8 }
 0xb88   :  { %550 = vrot.lane.b32.xlu2 %v833_v40, %s905_s1  ;;  %v835_v48 = vpop.eup %834 }
 0xb89   :  { %v518_v50 = vmul.f32 0.5, %v835_v48  ;;  %v501_v58 = vmul.f32 0.5, %v500_v57  ;;  %v645_v48 = vrot.slane %v1041_v15, 7 }
 0xb8b   :  { %v519_v51 = vadd.f32 0.5, %v518_v50  ;;  %836 = vtanh.f32 %v501_v58  ;;  %v657_v50 = vrot.slane %v1119_v35, 7 }
 0xb91   :  { %v837_v60 = vpop.eup %836 }
 0xb92   :  { %v503_v61 = vmul.f32 0.5, %v837_v60 }
 0xb94   :  { %v504_v62 = vadd.f32 0.5, %v503_v61 }
 0xb96   :  { %v548_v1 = vmul.f32 %v546_v0, %v504_v62  ;;  %v649_v0 = vrot.slane %v1067_v59, 7 }
 0xbe2   :  { %v551_v52 = vpop.permute.xlu2 %550 }
 0xbe3   :  { %v553_v53 = vmul.f32 %v551_v52, %v519_v51 }
 0xbe5   :  { %555 = vrot.lane.b32.xlu1 %v553_v53, %s904_s19 }
 0xc57   :  { %v556_v6 = vpop.permute.xlu1 %555 }
 0xc58   :  { %v1170_v10 = vadd.f32 %v556_v6, %v548_v1  ;;  %v661_v1 = vrot.slane %v1145_v25, 7 }
 0xc5a   :  { %838 = vtanh.f32 %v1170_v10  ;;  %v622_v26 = vrot.slane %v1170_v10, 7 }
 0xc5b   :  { %840 = vtanh.f32 %v529_v21 }
 0xc5c   :  { %v696_v46 = vsel %vm685_vm7, %v695_v4, %v622_v26 }
 0xc5d   :  { %701 = vst.msk [vmem:[#allocation5] sm:$0xff] %vm697_vm8, %v696_v46 }
 0xc60   :  { %v839_v49 = vpop.eup %838 }
 0xc61   :  { %561 = vrot.lane.b32.xlu2 %v839_v49, %s905_s1  ;;  %v841_v9 = vpop.eup %840 }
 0xc62   :  { %v531_v12 = vmul.f32 0.5, %v841_v9 }
 0xc64   :  { %v532_v13 = vadd.f32 0.5, %v531_v12  ;;  %v704_v12 = vperm.slane %v70_v18, 0 }
 0xcbb   :  { %v562_v14 = vpop.permute.xlu2 %561 }
 0xcbc   :  { %v564_v16 = vmul.f32 %v562_v14, %v532_v13 }
 0xcbe   :  { %566 = vst [vmem:[#allocation1] sm:$0xff] %v564_v16  ;;  %v665_v27 = vrot.slane %v564_v16, 7 }
 0xcc5   :  { %v568_v17 = vld [vmem:[#allocation1 + $0x6] ss:$9 sm:$0xff] }
 0xcc6   :  { %581 = vst [vmem:[#allocation1] sm:$0xff] %v564_v16 }
 0xccd   :  { %v583_v19 = vld [vmem:[#allocation1 + $0x6] ss:$9 sm:$0xff] }
 0xcce   :  { %584 = vrot.lane.b32.xlu1 %v583_v19, %s904_s19  ;;  %596 = vst [vmem:[#allocation1] sm:$0xff] %v564_v16 }
 0xcd5   :  { %v598_v20 = vld [vmem:[#allocation1 + $0x6] ss:$9 sm:$0xff] }
 0xcd6   :  { %609 = vst [vmem:[#allocation1] sm:$0xff] %v564_v16  ;;  %v600_v5 = vmul.f32 %v598_v20, %v987_v3 }
 0xcd8   :  { %v602_v6 = vperm.slane %v600_v5, 0 }
 0xcda   :  { %v604_v7 = vadd.f32 %v602_v6, %v993_v8 }
 0xcdc   :  { %v605_v10 = vmul.f32 0.5, %v604_v7 }
 0xcdd   :  { %v611_v22 = vld [vmem:[#allocation1 + $0x6] ss:$9 sm:$0xff] }
 0xcde   :  { %612 = vrot.lane.b32.xlu0 %v611_v22, %s906_s20 }
 0xce6   :  { %569 = vrot.lane.b32.xlu0 %v568_v17, %s905_s1 }
 0xcee   :  { %642 = vrot.lane.b32.xlu0 %v641_v23, %s905_s1 }
 0xcf6   :  { %654 = vrot.lane.b32.xlu0 %v653_v24, %s905_s1 }
 0xcfe   :  { %666 = vrot.lane.b32.xlu0 %v665_v27, %s905_s1  ;;  %v715_v27 = vstv %s1258_s7 }
 0xd40   :  { %v585_v39 = vpop.permute.xlu1 %584 }
 0xd41   :  { %v587_v37 = vmul.f32 %v585_v39, %v987_v3 }
 0xd43   :  { %v589_v38 = vperm.slane %v587_v37, 0 }
 0xd45   :  { %v591_v45 = vadd.f32 %v589_v38, %v993_v8 }
 0xd47   :  { %v592_v40 = vmul.f32 0.5, %v591_v45 }
 0xd50   :  { %v613_v28 = vpop.permute.xlu0 %612 }
 0xd51   :  { %v615_v30 = vmul.f32 %v613_v28, %v987_v3 }
 0xd53   :  { %v617_v32 = vperm.slane %v615_v30, 0 }
 0xd55   :  { %v619_v33 = vadd.f32 %v617_v32, %v993_v8 }
 0xd57   :  { %842 = vtanh.f32 %v619_v33 }
 0xd58   :  { %844 = vtanh.f32 %v592_v40  ;;  %v570_v51 = vpop.permute.xlu0 %569 }
 0xd59   :  { %v572_v52 = vmul.f32 %v570_v51, %v987_v3 }
 0xd5b   :  { %v574_v53 = vperm.slane %v572_v52, 0 }
 0xd5d   :  { %v843_v36 = vpop.eup %842  ;;  %v576_v54 = vadd.f32 %v574_v53, %v993_v8 }
 0xd5e   :  { %626 = vrot.lane.b32.xlu2 %v843_v36, %s905_s1  ;;  %v845_v41 = vpop.eup %844 }
 0xd5f   :  { %v594_v42 = vmul.f32 0.5, %v845_v41  ;;  %v577_v55 = vmul.f32 0.5, %v576_v54 }
 0xd61   :  { %v595_v43 = vadd.f32 0.5, %v594_v42  ;;  %846 = vtanh.f32 %v577_v55 }
 0xd67   :  { %v847_v56 = vpop.eup %846 }
 0xd68   :  { %v579_v57 = vmul.f32 0.5, %v847_v56 }
 0xd6a   :  { %v580_v58 = vadd.f32 0.5, %v579_v57 }
 0xd6c   :  { %v624_v15 = vmul.f32 %v622_v26, %v580_v58  ;;  %v643_v26 = vpop.permute.xlu0 %642 }
 0xd6d   :  { %v675_v31 = vsel %vm674_vm2, %v976_v2, %v643_v26 }
 0xd74   :  { %v655_v25 = vpop.permute.xlu0 %654 }
 0xd7c   :  { %v667_v16 = vpop.permute.xlu0 %666 }
 0xdb8   :  { %v627_v44 = vpop.permute.xlu2 %626 }
 0xdb9   :  { %v629_v47 = vmul.f32 %v627_v44, %v595_v43 }
 0xdbb   :  { %631 = vrot.lane.b32.xlu1 %v629_v47, %s904_s19 }
 0xdc3   :  { %646 = vrot.lane.b32.xlu1 %v645_v48, %s905_s1 }
 0xdcb   :  { %658 = vrot.lane.b32.xlu1 %v657_v50, %s905_s1 }
 0xe2d   :  { %v632_v60 = vpop.permute.xlu1 %631 }
 0xe2e   :  { %v634_v61 = vadd.f32 %v632_v60, %v624_v15 }
 0xe30   :  { %848 = vtanh.f32 %v634_v61  ;;  %v688_v35 = vrot.slane %v634_v61, 7 }
 0xe31   :  { %850 = vtanh.f32 %v605_v10 }
 0xe32   :  { %702 = vst.msk [vmem:[#allocation5 + $0x8] sm:$0x1] %vm699_vm9, %v688_v35 }
 0xe33   :  { %749 = dma.vmem_to_hbm [thread:$0]  %s742_s29, 256, %s744_s12, [#allocation6], %s909_s13, %s909_s13, %s910_s14  }
 0xe35   :  { %v647_v49 = vpop.permute.xlu1 %646 }
 0xe36   :  { %v849_v62 = vpop.eup %848  ;;  %v677_v34 = vsel %vm676_vm3, %v675_v31, %v647_v49 }
 0xe37   :  { %637 = vrot.lane.b32.xlu2 %v849_v62, %s905_s1  ;;  %v851_v11 = vpop.eup %850 }
 0xe38   :  { %v607_v29 = vmul.f32 0.5, %v851_v11 }
 0xe3a   :  { %v608_v63 = vadd.f32 0.5, %v607_v29 }
 0xe3d   :  { %v659_v9 = vpop.permute.xlu1 %658 }
 0xe3f   :  { %650 = vrot.lane.b32.xlu2 %v649_v0, %s905_s1 }
 0xe47   :  { %662 = vrot.lane.b32.xlu2 %v661_v1, %s905_s1 }
 0xe91   :  { %v638_v4 = vpop.permute.xlu2 %637 }
 0xe92   :  { %v640_v46 = vmul.f32 %v638_v4, %v608_v63 }
 0xe94   :  { %v670_v59 = vrot.slane %v640_v46, 7 }
 0xe96   :  { %671 = vrot.lane.b32.xlu1 %v670_v59, %s905_s1 }
 0xe99   :  { %v651_v3 = vpop.permute.xlu2 %650 }
 0xe9a   :  { %v679_v8 = vsel %vm678_vm4, %v677_v34, %v651_v3 }
 0xe9b   :  { %v680_v21 = vsel %vm45_vm0, %v679_v8, %v655_v25 }
 0xe9c   :  { %v682_v14 = vsel %vm681_vm5, %v680_v21, %v659_v9 }
 0xea1   :  { %v663_v13 = vpop.permute.xlu2 %662 }
 0xea2   :  { %v684_v17 = vsel %vm683_vm6, %v682_v14, %v663_v13 }
 0xea3   :  { %v686_v2 = vsel %vm685_vm7, %v684_v17, %v667_v16 }
 0xea4   :  { %v706_v19 = vmul.f32 %v704_v12, %v686_v2  ;;  %698 = vst.msk [vmem:[#allocation3] sm:$0xff] %vm697_vm8, %v686_v2 }
 0xea6   :  { %v709_v20 = vsel %vm708_vm10, %v706_v19, 0.0 }
 0xea7   :  { %710 = vadd.xlane.f32.xlu2 %v709_v20 }
 0xf08   :  { %v672_v22 = vpop.permute.xlu1 %671 }
 0xf09   :  { %700 = vst.msk [vmem:[#allocation3 + $0x8] sm:$0x1] %vm699_vm9, %v672_v22  ;;  %v707_v23 = vmul.f32 %v704_v12, %v672_v22 }
 0xf0a   :  { %736 = dma.vmem_to_hbm [thread:$0]  %s729_s6, 256, %s731_s27, [#allocation4], %s909_s13, %s909_s13, %s910_s14  }
 0xf0b   :  { %v712_v24 = vsel %vm699_vm9, %v707_v23, 0.0 }
 0xf0c   :  { %713 = vadd.xlane.f32.xlu0 %v712_v24 }
 0xf1a   :  { %v711_v28 = vpop.xlane.xlu2 %710 }
 0xf1b   :  { %v716_v30 = vadd.f32 %v715_v27, %v711_v28 }
 0xf1d   :  { %719 = vst.msk [vmem:[%s1259_s8 - $0x1] sm:$0xfe] %vm718_vm11, %v716_v30 }
 0xf7f   :  { %v714_v32 = vpop.xlane.xlu0 %713 }
 0xf80   :  { %v717_v33 = vadd.f32 %v715_v27, %v714_v32 }
 0xf82   :  { %721 = vst.msk [vmem:[%s1259_s8 + $0x7] sm:$0x1] %vm720_vm12, %v717_v33 }
 0xf83   :  { %900 = dma.done.wait [#allocation4], 256  }
 0xf84   :  { %901 = vsyncadd [#allocation4], 4294967040 }
 0xf85   :  { %902 = dma.done.wait [#allocation6], 256  }
 0xf86   :  { %903 = vsyncadd [#allocation6], 4294967040 }
 0xf87   :  { %760 = vsyncpa [#allocation4], 1 }
 0xf88   :  { %761 = vsyncpa [#allocation6], 1 }

</bundles_post_ra>
